<compile_context>
chip_gen: v5e
topology: v5e:2x2
jax: 0.10.0
libtpu: 0.0.40
codegen_flags: <defaults>
</compile_context>

<pallas_src>
import functools
from itertools import permutations

import numpy as np
import jax
import jax.numpy as jnp
from jax import lax
from jax.experimental import pallas as pl
from jax.experimental.pallas import tpu as pltpu

try:  # host-side Hungarian; optional dependency
    from scipy.optimize import linear_sum_assignment as _scipy_lsa
except ImportError:  # pragma: no cover
    _scipy_lsa = None


def _round_up(x: int, m: int) -> int:
    return ((x + m - 1) // m) * m


# ----------------------------------------------------------------------------
# Catmull-Rom sampling basis (deterministic parameter setup).
# ----------------------------------------------------------------------------
def catrom_basis(num_sample_points: int) -> np.ndarray:
    """(S, 4) Catmull-Rom blending matrix for t in linspace(0, 1, S)."""
    t = np.linspace(0.0, 1.0, num_sample_points, dtype=np.float64)
    t2, t3 = t * t, t * t * t
    b0 = 0.5 * (-t3 + 2.0 * t2 - t)
    b1 = 0.5 * (3.0 * t3 - 5.0 * t2 + 2.0)
    b2 = 0.5 * (-3.0 * t3 + 4.0 * t2 + t)
    b3 = 0.5 * (t3 - t2)
    return np.stack([b0, b1, b2, b3], axis=1).astype(np.float32)  # (S, 4)


def expanded_basis(num_sample_points: int, padded_cols: int | None = None) -> np.ndarray:
    """W of shape (8, padded_cols) with (ctrl.flatten() @ W)[:, :2S] equal to
    sample_points(ctrl).flatten(start_dim=-2) for ctrl of shape (..., 4, 2).
    Lane-padding columns beyond 2S are zero (exact for the L1 sum)."""
    B = catrom_basis(num_sample_points)            # (S, 4)
    S = num_sample_points
    cols = 2 * S if padded_cols is None else padded_cols
    W = np.zeros((8, cols), dtype=np.float32)
    for c in range(4):
        for k in range(2):
            W[2 * c + k, k:2 * S:2] = B[:, c]
    return W


# ----------------------------------------------------------------------------
# Pallas kernel: one (TN, TM) tile of
#   C = class_weight * cost_class + coord_weight * L1_cdist
# ----------------------------------------------------------------------------
def _matcher_cost_kernel(logits_ref, qctrl_ref, onehot_ref, basis_ref, tsamp_ref,
                         cost_ref, delta_sc, qsamp_sc, *,
                         alpha, gamma, coord_weight, fold_coord, chunk, n_chunks):
    # ---- j-invariant work: focal-cost delta + Catmull-Rom query sampling ----
    # Computed once per i-row of the grid (j is innermost, "arbitrary") and
    # persisted in scratch across all M tiles of that row.
    @pl.when(pl.program_id(1) == 0)
    def _():
        x = logits_ref[...]                                   # (TN, C)
        prob = jax.nn.sigmoid(x)
        one_m = 1.0 - prob
        if gamma == 2.0:
            pow_p, pow_1mp = prob * prob, one_m * one_m
        else:
            pow_p, pow_1mp = prob ** gamma, one_m ** gamma
        # Exact reference formulation (with the 1e-8 epsilon) for parity.
        neg = (1.0 - alpha) * pow_p * (-jnp.log(one_m + 1e-8))
        pos = alpha * pow_1mp * (-jnp.log(prob + 1e-8))
        delta_sc[...] = pos - neg                             # (TN, C)

        qs = jnp.dot(qctrl_ref[...], basis_ref[...],
                     preferred_element_type=jnp.float32)      # (TN, 2S_pad)
        for c in range(n_chunks):                             # static; j==0 only
            qsamp_sc[c] = qs[:, c * chunk:(c + 1) * chunk]

    # ---- classification cost: one-hot gather matmul (class_weight folded) ---
    cost_class = jnp.dot(delta_sc[...], onehot_ref[...],
                         preferred_element_type=jnp.float32)   # (TN, TM)

    # ---- L1 cdist over sampled points, chunked fori_loop --------------------
    # coord_weight is folded into basis/targets when >= 0, so the accumulator
    # starts from cost_class and the final store needs no extra FMA.
    init = cost_class if fold_coord else jnp.zeros_like(cost_class)

    def body(c, acc):
        base = pl.multiple_of(c * chunk, chunk)
        q_blk = qsamp_sc[c]                                    # (TN, chunk)
        t_blk = tsamp_ref[pl.ds(base, chunk), :]               # (chunk, TM)
        for u in range(chunk):                                 # small static unroll
            acc = acc + jnp.abs(q_blk[:, u:u + 1] - t_blk[u:u + 1, :])
        return acc

    acc = lax.fori_loop(0, n_chunks, body, init)

    if fold_coord:
        cost_ref[...] = acc
    else:
        cost_ref[...] = cost_class + coord_weight * acc


def matcher_cost_matrix(pred_logits, pred_catroms, tgt_ids, tgt_catroms, *,
                        num_sample_points=100, class_weight=1.0,
                        coord_weight=1.0, focal_alpha=0.25, focal_gamma=2.0):
    """Returns the (bs, num_queries, total_num_targets) matching-cost matrix."""
    bs, num_queries, num_classes = pred_logits.shape
    N = bs * num_queries
    M = int(tgt_ids.shape[0])
    two_s = 2 * num_sample_points
    two_s_pad = _round_up(two_s, 128)

    CHUNK = 8                                   # s-values per fori_loop iteration
    n_chunks = (two_s + CHUNK - 1) // CHUNK     # padded s beyond 2S contribute 0

    # TN=128 keeps the f32 accumulator at 16 vregs and padded-row waste <=7% at
    # DETR-scale N; TM=128 keeps output stores lane-dense.
    TM = 128
    TN = min(128, _round_up(N, 8))
    N_pad = _round_up(N, TN)
    M_pad = _round_up(max(M, 1), TM)

    logits = jnp.pad(pred_logits.reshape(N, num_classes).astype(jnp.float32),
                     ((0, N_pad - N), (0, 0)))
    q_ctrl = jnp.pad(pred_catroms.reshape(N, 8).astype(jnp.float32),
                     ((0, N_pad - N), (0, 0)))
    t_ctrl = jnp.pad(tgt_catroms.reshape(M, 8).astype(jnp.float32),
                     ((0, M_pad - M), (0, 0)))

    # One-hot gather matrix with class_weight folded in; padded target columns
    # are zero (garbage coord cost there is sliced off before the assignment).
    onehot = class_weight * jax.nn.one_hot(tgt_ids, num_classes, dtype=jnp.float32).T
    onehot = jnp.pad(onehot, ((0, 0), (0, M_pad - M)))            # (C, M_pad)

    # Fold coord_weight into the sampling basis (|c*q - c*t| = c*|q - t|, c>=0).
    fold_coord = float(coord_weight) >= 0.0
    W_np = expanded_basis(num_sample_points, two_s_pad)           # (8, 2S_pad)
    if fold_coord:
        W_np = float(coord_weight) * W_np
    W = jnp.asarray(W_np)

    # Target sample points: N-invariant, computed once; transposed so the
    # sample axis is on sublanes and the target axis on lanes in the kernel.
    t_samp_T = jnp.dot(t_ctrl, W).T                               # (2S_pad, M_pad)

    kernel = functools.partial(
        _matcher_cost_kernel,
        alpha=float(focal_alpha), gamma=float(focal_gamma),
        coord_weight=float(coord_weight), fold_coord=fold_coord,
        chunk=CHUNK, n_chunks=int(n_chunks))

    cost = pl.pallas_call(
        kernel,
        out_shape=jax.ShapeDtypeStruct((N_pad, M_pad), jnp.float32),
        grid=(N_pad // TN, M_pad // TM),
        in_specs=[
            pl.BlockSpec((TN, num_classes), lambda i, j: (i, 0)),   # logits
            pl.BlockSpec((TN, 8), lambda i, j: (i, 0)),             # query ctrl pts
            pl.BlockSpec((num_classes, TM), lambda i, j: (0, j)),   # scaled one-hot
            pl.BlockSpec((8, two_s_pad), lambda i, j: (0, 0)),      # scaled CR basis
            pl.BlockSpec((two_s_pad, TM), lambda i, j: (0, j)),     # target samples^T
        ],
        out_specs=pl.BlockSpec((TN, TM), lambda i, j: (i, j)),
        scratch_shapes=[
            pltpu.VMEM((TN, num_classes), jnp.float32),             # focal delta
            pltpu.VMEM((int(n_chunks), TN, CHUNK), jnp.float32),    # query samples
        ],
        # i "parallel" (megacore-shardable), j "arbitrary" so the j==0 hoist
        # always precedes the other M tiles of the same i on each core.
        compiler_params=pltpu.CompilerParams(
            dimension_semantics=("parallel", "arbitrary")),
    )(logits, q_ctrl, onehot, W, t_samp_T)

    # Slice off padded rows/columns BEFORE any assignment is done.
    return cost[:N, :M].reshape(bs, num_queries, M)


# ----------------------------------------------------------------------------
# Host-side Hungarian assignment.
# TODO(synk): linear_sum_assignment has no Pallas equivalent; it runs on host,
# exactly like the reference module's .cpu() path (scipy if available,
# exact brute force for tiny problems otherwise).
# ----------------------------------------------------------------------------
def _linear_sum_assignment(cost: np.ndarray):
    if _scipy_lsa is not None:
        rows, cols = _scipy_lsa(cost)
        return np.asarray(rows, np.int64), np.asarray(cols, np.int64)
    nq, m = cost.shape
    assert m <= nq, "brute-force fallback requires num_targets <= num_queries"
    best_rows, best_val = None, np.inf
    for rows in permutations(range(nq), m):
        val = sum(cost[rows[k], k] for k in range(m))
        if val < best_val:
            best_val, best_rows = val, rows
    rows = np.asarray(best_rows, dtype=np.int64)
    cols = np.arange(m, dtype=np.int64)
    order = np.argsort(rows)
    return rows[order], cols[order]


def catrom_hungarian_matcher(outputs, targets, **kw):
    tgt_ids = jnp.concatenate([t["labels"] for t in targets])
    tgt_catroms = jnp.concatenate([t["catroms"] for t in targets])
    C = matcher_cost_matrix(outputs["pred_logits"], outputs["pred_catroms"],
                            tgt_ids, tgt_catroms, **kw)
    C = np.asarray(jax.block_until_ready(C))
    sizes = [int(t["catroms"].shape[0]) for t in targets]
    indices, off = [], 0
    for i, sz in enumerate(sizes):
        indices.append(_linear_sum_assignment(C[i, :, off:off + sz]))
        off += sz
    return indices, C


# ----------------------------------------------------------------------------
# Plain-JAX reference (faithful to the PyTorch formulation) for validation.
# ----------------------------------------------------------------------------
def _reference_cost(pred_logits, pred_catroms, tgt_ids, tgt_catroms, *,
                    num_sample_points, class_weight, coord_weight,
                    focal_alpha, focal_gamma):
    bs, nq, C = pred_logits.shape
    prob = jax.nn.sigmoid(pred_logits.reshape(-1, C))
    neg = (1 - focal_alpha) * prob ** focal_gamma * -jnp.log(1 - prob + 1e-8)
    pos = focal_alpha * (1 - prob) ** focal_gamma * -jnp.log(prob + 1e-8)
    cost_class = (pos - neg)[:, tgt_ids]
    B = jnp.asarray(catrom_basis(num_sample_points))          # (S, 4)
    q = jnp.einsum("sc,nck->nsk", B, pred_catroms.reshape(-1, 4, 2)).reshape(bs * nq, -1)
    t = jnp.einsum("sc,nck->nsk", B, tgt_catroms.reshape(-1, 4, 2)).reshape(tgt_catroms.shape[0], -1)
    cost_coord = jnp.sum(jnp.abs(q[:, None, :] - t[None, :, :]), axis=-1)
    return (class_weight * cost_class + coord_weight * cost_coord).reshape(bs, nq, -1)


if __name__ == "__main__":
    key = jax.random.PRNGKey(0)
    bs, num_queries, num_classes = 2, 8, 4
    num_sample_points = 100

    k1, k2, k3, k4, k5 = jax.random.split(key, 5)
    outputs = {
        "pred_logits": jax.random.normal(k1, (bs, num_queries, num_classes), jnp.float32),
        "pred_catroms": jax.random.uniform(k2, (bs, num_queries, 8), jnp.float32),
    }
    sizes = [3, 2]
    targets = [
        {"labels": jax.random.randint(k3, (sizes[0],), 0, num_classes),
         "catroms": jax.random.uniform(k4, (sizes[0], 4, 2), jnp.float32)},
        {"labels": jax.random.randint(k5, (sizes[1],), 0, num_classes),
         "catroms": jax.random.uniform(jax.random.fold_in(k5, 1), (sizes[1], 4, 2), jnp.float32)},
    ]

    hp = dict(num_sample_points=num_sample_points, class_weight=1.0,
              coord_weight=1.0, focal_alpha=0.25, focal_gamma=2.0)

    indices, C_kernel = catrom_hungarian_matcher(outputs, targets, **hp)

    # Validate the cost matrix against the plain-JAX reference.
    tgt_ids = jnp.concatenate([t["labels"] for t in targets])
    tgt_catroms = jnp.concatenate([t["catroms"] for t in targets])
    C_ref = np.asarray(_reference_cost(outputs["pred_logits"], outputs["pred_catroms"],
                                       tgt_ids, tgt_catroms, **hp))
    np.testing.assert_allclose(C_kernel, C_ref, rtol=1e-3, atol=1e-3)

    # Basic sanity on assignment output structure.
    for (rows, cols), sz in zip(indices, sizes):
        assert rows.shape == (sz,) and cols.shape == (sz,)
        assert rows.dtype == np.int64 and cols.dtype == np.int64

    print("KERNEL_OK")
</pallas_src>

<mosaic_0001>
module attributes {stable_mosaic.version = 11 : i64} {
  func.func @_matcher_cost_kernel(%arg0: i32, %arg1: i32, %arg2: memref<16x4xf32, #tpu.memory_space<vmem>>, %arg3: memref<16x8xf32, #tpu.memory_space<vmem>>, %arg4: memref<4x128xf32, #tpu.memory_space<vmem>>, %arg5: memref<8x256xf32, #tpu.memory_space<vmem>>, %arg6: memref<256x128xf32, #tpu.memory_space<vmem>>, %arg7: memref<16x128xf32, #tpu.memory_space<vmem>>, %arg8: memref<16x4xf32, #tpu.memory_space<vmem>>, %arg9: memref<25x16x8xf32, #tpu.memory_space<vmem>>) attributes {dimension_semantics = [#tpu.dimension_semantics<parallel>, #tpu.dimension_semantics<arbitrary>], iteration_bounds = array<i64: 1, 1>, scalar_prefetch = 0 : i64, scratch_operands = 2 : i64, tpu.core_type = #tpu.core_type<tc>, window_params = [{transform_indices = @transform_0, window_bounds = array<i64: 16, 4>}, {transform_indices = @transform_1, window_bounds = array<i64: 16, 8>}, {transform_indices = @transform_2, window_bounds = array<i64: 4, 128>}, {pipeline_mode = #tpu.pipeline_mode<synchronous>, transform_indices = @transform_3, window_bounds = array<i64: 8, 256>}, {transform_indices = @transform_4, window_bounds = array<i64: 256, 128>}, {transform_indices = @transform_5, window_bounds = array<i64: 16, 128>}]} {
    %c0_i32 = arith.constant 0 : i32
    %0 = arith.cmpi eq, %arg1, %c0_i32 : i32
    %1 = arith.extui %0 : i1 to i32
    %c0_i32_0 = arith.constant 0 : i32
    %2 = arith.cmpi ne, %1, %c0_i32_0 : i32
    scf.if %2 {
      %c0_8 = arith.constant 0 : index
      %c0_9 = arith.constant 0 : index
      %9 = vector.load %arg2[%c0_8, %c0_9] : memref<16x4xf32, #tpu.memory_space<vmem>>, vector<16x4xf32>
      %10 = arith.negf %9 : vector<16x4xf32>
      %11 = math.exp %10 : vector<16x4xf32>
      %cst_10 = arith.constant 1.000000e+00 : f32
      %12 = vector.broadcast %cst_10 : f32 to vector<16x4xf32>
      %13 = arith.addf %12, %11 : vector<16x4xf32>
      %14 = arith.divf %12, %13 : vector<16x4xf32>
      %cst_11 = arith.constant 1.000000e+00 : f32
      %15 = vector.broadcast %cst_11 : f32 to vector<16x4xf32>
      %16 = arith.subf %15, %14 : vector<16x4xf32>
      %17 = arith.mulf %14, %14 : vector<16x4xf32>
      %18 = arith.mulf %16, %16 : vector<16x4xf32>
      %cst_12 = arith.constant 7.500000e-01 : f32
      %19 = vector.broadcast %cst_12 : f32 to vector<16x4xf32>
      %20 = arith.mulf %19, %17 : vector<16x4xf32>
      %cst_13 = arith.constant 9.99999993E-9 : f32
      %21 = vector.broadcast %cst_13 : f32 to vector<16x4xf32>
      %22 = arith.addf %16, %21 : vector<16x4xf32>
      %23 = math.log %22 : vector<16x4xf32>
      %cst_14 = arith.constant 0.000000e+00 : f32
      %24 = vector.broadcast %cst_14 : f32 to vector<16x4xf32>
      %25 = arith.subf %24, %23 : vector<16x4xf32>
      %26 = arith.mulf %20, %25 : vector<16x4xf32>
      %cst_15 = arith.constant 2.500000e-01 : f32
      %27 = vector.broadcast %cst_15 : f32 to vector<16x4xf32>
      %28 = arith.mulf %27, %18 : vector<16x4xf32>
      %cst_16 = arith.constant 9.99999993E-9 : f32
      %29 = vector.broadcast %cst_16 : f32 to vector<16x4xf32>
      %30 = arith.addf %14, %29 : vector<16x4xf32>
      %31 = math.log %30 : vector<16x4xf32>
      %cst_17 = arith.constant 0.000000e+00 : f32
      %32 = vector.broadcast %cst_17 : f32 to vector<16x4xf32>
      %33 = arith.subf %32, %31 : vector<16x4xf32>
      %34 = arith.mulf %28, %33 : vector<16x4xf32>
      %35 = arith.subf %34, %26 : vector<16x4xf32>
      %c0_18 = arith.constant 0 : index
      %c0_19 = arith.constant 0 : index
      %36 = vector.load %arg8[%c0_18, %c0_19] : memref<16x4xf32, #tpu.memory_space<vmem>>, vector<16x4xf32>
      tpu.vector_store %arg8[%c0_18, %c0_19], %35 {strides = array<i32>} : memref<16x4xf32, #tpu.memory_space<vmem>>, vector<16x4xf32>,
      %c0_20 = arith.constant 0 : index
      %c0_21 = arith.constant 0 : index
      %37 = vector.load %arg3[%c0_20, %c0_21] : memref<16x8xf32, #tpu.memory_space<vmem>>, vector<16x8xf32>
      %c0_22 = arith.constant 0 : index
      %c0_23 = arith.constant 0 : index
      %38 = vector.load %arg5[%c0_22, %c0_23] : memref<8x256xf32, #tpu.memory_space<vmem>>, vector<8x256xf32>
      %cst_24 = arith.constant dense<0.000000e+00> : vector<16x256xf32>
      %39 = tpu.matmul %37, %38, %cst_24 {dimension_numbers = #tpu.dot_dimension_numbers<[1], [0], [0], [1], [0, 0, 1, 1], [], []>} : vector<16x8xf32>, vector<8x256xf32>, vector<16x256xf32> -> vector<16x256xf32>
      %40 = vector.extract_strided_slice %39 {offsets = [0, 0], sizes = [16, 8], strides = [1, 1]} : vector<16x256xf32> to vector<16x8xf32>
      %c0_25 = arith.constant 0 : index
      %c0_26 = arith.constant 0 : index
      %c0_27 = arith.constant 0 : index
      %41 = vector.load %arg9[%c0_25, %c0_26, %c0_27] : memref<25x16x8xf32, #tpu.memory_space<vmem>>, vector<1x16x8xf32>
      %42 = vector.shape_cast %41 : vector<1x16x8xf32> to vector<16x8xf32>
      %43 = vector.shape_cast %40 : vector<16x8xf32> to vector<1x16x8xf32>
      tpu.vector_store %arg9[%c0_25, %c0_26, %c0_27], %43 {strides = array<i32>} : memref<25x16x8xf32, #tpu.memory_space<vmem>>, vector<1x16x8xf32>,
      %44 = vector.extract_strided_slice %39 {offsets = [0, 8], sizes = [16, 8], strides = [1, 1]} : vector<16x256xf32> to vector<16x8xf32>
      %c1 = arith.constant 1 : index
      %c0_28 = arith.constant 0 : index
      %c0_29 = arith.constant 0 : index
      %45 = vector.load %arg9[%c1, %c0_28, %c0_29] : memref<25x16x8xf32, #tpu.memory_space<vmem>>, vector<1x16x8xf32>
      %46 = vector.shape_cast %45 : vector<1x16x8xf32> to vector<16x8xf32>
      %47 = vector.shape_cast %44 : vector<16x8xf32> to vector<1x16x8xf32>
      tpu.vector_store %arg9[%c1, %c0_28, %c0_29], %47 {strides = array<i32>} : memref<25x16x8xf32, #tpu.memory_space<vmem>>, vector<1x16x8xf32>,
      %48 = vector.extract_strided_slice %39 {offsets = [0, 16], sizes = [16, 8], strides = [1, 1]} : vector<16x256xf32> to vector<16x8xf32>
      %c2 = arith.constant 2 : index
      %c0_30 = arith.constant 0 : index
      %c0_31 = arith.constant 0 : index
      %49 = vector.load %arg9[%c2, %c0_30, %c0_31] : memref<25x16x8xf32, #tpu.memory_space<vmem>>, vector<1x16x8xf32>
      %50 = vector.shape_cast %49 : vector<1x16x8xf32> to vector<16x8xf32>
      %51 = vector.shape_cast %48 : vector<16x8xf32> to vector<1x16x8xf32>
      tpu.vector_store %arg9[%c2, %c0_30, %c0_31], %51 {strides = array<i32>} : memref<25x16x8xf32, #tpu.memory_space<vmem>>, vector<1x16x8xf32>,
      %52 = vector.extract_strided_slice %39 {offsets = [0, 24], sizes = [16, 8], strides = [1, 1]} : vector<16x256xf32> to vector<16x8xf32>
      %c3 = arith.constant 3 : index
      %c0_32 = arith.constant 0 : index
      %c0_33 = arith.constant 0 : index
      %53 = vector.load %arg9[%c3, %c0_32, %c0_33] : memref<25x16x8xf32, #tpu.memory_space<vmem>>, vector<1x16x8xf32>
      %54 = vector.shape_cast %53 : vector<1x16x8xf32> to vector<16x8xf32>
      %55 = vector.shape_cast %52 : vector<16x8xf32> to vector<1x16x8xf32>
      tpu.vector_store %arg9[%c3, %c0_32, %c0_33], %55 {strides = array<i32>} : memref<25x16x8xf32, #tpu.memory_space<vmem>>, vector<1x16x8xf32>,
      %56 = vector.extract_strided_slice %39 {offsets = [0, 32], sizes = [16, 8], strides = [1, 1]} : vector<16x256xf32> to vector<16x8xf32>
      %c4 = arith.constant 4 : index
      %c0_34 = arith.constant 0 : index
      %c0_35 = arith.constant 0 : index
      %57 = vector.load %arg9[%c4, %c0_34, %c0_35] : memref<25x16x8xf32, #tpu.memory_space<vmem>>, vector<1x16x8xf32>
      %58 = vector.shape_cast %57 : vector<1x16x8xf32> to vector<16x8xf32>
      %59 = vector.shape_cast %56 : vector<16x8xf32> to vector<1x16x8xf32>
      tpu.vector_store %arg9[%c4, %c0_34, %c0_35], %59 {strides = array<i32>} : memref<25x16x8xf32, #tpu.memory_space<vmem>>, vector<1x16x8xf32>,
      %60 = vector.extract_strided_slice %39 {offsets = [0, 40], sizes = [16, 8], strides = [1, 1]} : vector<16x256xf32> to vector<16x8xf32>
      %c5 = arith.constant 5 : index
      %c0_36 = arith.constant 0 : index
      %c0_37 = arith.constant 0 : index
      %61 = vector.load %arg9[%c5, %c0_36, %c0_37] : memref<25x16x8xf32, #tpu.memory_space<vmem>>, vector<1x16x8xf32>
      %62 = vector.shape_cast %61 : vector<1x16x8xf32> to vector<16x8xf32>
      %63 = vector.shape_cast %60 : vector<16x8xf32> to vector<1x16x8xf32>
      tpu.vector_store %arg9[%c5, %c0_36, %c0_37], %63 {strides = array<i32>} : memref<25x16x8xf32, #tpu.memory_space<vmem>>, vector<1x16x8xf32>,
      %64 = vector.extract_strided_slice %39 {offsets = [0, 48], sizes = [16, 8], strides = [1, 1]} : vector<16x256xf32> to vector<16x8xf32>
      %c6 = arith.constant 6 : index
      %c0_38 = arith.constant 0 : index
      %c0_39 = arith.constant 0 : index
      %65 = vector.load %arg9[%c6, %c0_38, %c0_39] : memref<25x16x8xf32, #tpu.memory_space<vmem>>, vector<1x16x8xf32>
      %66 = vector.shape_cast %65 : vector<1x16x8xf32> to vector<16x8xf32>
      %67 = vector.shape_cast %64 : vector<16x8xf32> to vector<1x16x8xf32>
      tpu.vector_store %arg9[%c6, %c0_38, %c0_39], %67 {strides = array<i32>} : memref<25x16x8xf32, #tpu.memory_space<vmem>>, vector<1x16x8xf32>,
      %68 = vector.extract_strided_slice %39 {offsets = [0, 56], sizes = [16, 8], strides = [1, 1]} : vector<16x256xf32> to vector<16x8xf32>
      %c7 = arith.constant 7 : index
      %c0_40 = arith.constant 0 : index
      %c0_41 = arith.constant 0 : index
      %69 = vector.load %arg9[%c7, %c0_40, %c0_41] : memref<25x16x8xf32, #tpu.memory_space<vmem>>, vector<1x16x8xf32>
      %70 = vector.shape_cast %69 : vector<1x16x8xf32> to vector<16x8xf32>
      %71 = vector.shape_cast %68 : vector<16x8xf32> to vector<1x16x8xf32>
      tpu.vector_store %arg9[%c7, %c0_40, %c0_41], %71 {strides = array<i32>} : memref<25x16x8xf32, #tpu.memory_space<vmem>>, vector<1x16x8xf32>,
      %72 = vector.extract_strided_slice %39 {offsets = [0, 64], sizes = [16, 8], strides = [1, 1]} : vector<16x256xf32> to vector<16x8xf32>
      %c8 = arith.constant 8 : index
      %c0_42 = arith.constant 0 : index
      %c0_43 = arith.constant 0 : index
      %73 = vector.load %arg9[%c8, %c0_42, %c0_43] : memref<25x16x8xf32, #tpu.memory_space<vmem>>, vector<1x16x8xf32>
      %74 = vector.shape_cast %73 : vector<1x16x8xf32> to vector<16x8xf32>
      %75 = vector.shape_cast %72 : vector<16x8xf32> to vector<1x16x8xf32>
      tpu.vector_store %arg9[%c8, %c0_42, %c0_43], %75 {strides = array<i32>} : memref<25x16x8xf32, #tpu.memory_space<vmem>>, vector<1x16x8xf32>,
      %76 = vector.extract_strided_slice %39 {offsets = [0, 72], sizes = [16, 8], strides = [1, 1]} : vector<16x256xf32> to vector<16x8xf32>
      %c9 = arith.constant 9 : index
      %c0_44 = arith.constant 0 : index
      %c0_45 = arith.constant 0 : index
      %77 = vector.load %arg9[%c9, %c0_44, %c0_45] : memref<25x16x8xf32, #tpu.memory_space<vmem>>, vector<1x16x8xf32>
      %78 = vector.shape_cast %77 : vector<1x16x8xf32> to vector<16x8xf32>
      %79 = vector.shape_cast %76 : vector<16x8xf32> to vector<1x16x8xf32>
      tpu.vector_store %arg9[%c9, %c0_44, %c0_45], %79 {strides = array<i32>} : memref<25x16x8xf32, #tpu.memory_space<vmem>>, vector<1x16x8xf32>,
      %80 = vector.extract_strided_slice %39 {offsets = [0, 80], sizes = [16, 8], strides = [1, 1]} : vector<16x256xf32> to vector<16x8xf32>
      %c10 = arith.constant 10 : index
      %c0_46 = arith.constant 0 : index
      %c0_47 = arith.constant 0 : index
      %81 = vector.load %arg9[%c10, %c0_46, %c0_47] : memref<25x16x8xf32, #tpu.memory_space<vmem>>, vector<1x16x8xf32>
      %82 = vector.shape_cast %81 : vector<1x16x8xf32> to vector<16x8xf32>
      %83 = vector.shape_cast %80 : vector<16x8xf32> to vector<1x16x8xf32>
      tpu.vector_store %arg9[%c10, %c0_46, %c0_47], %83 {strides = array<i32>} : memref<25x16x8xf32, #tpu.memory_space<vmem>>, vector<1x16x8xf32>,
      %84 = vector.extract_strided_slice %39 {offsets = [0, 88], sizes = [16, 8], strides = [1, 1]} : vector<16x256xf32> to vector<16x8xf32>
      %c11 = arith.constant 11 : index
      %c0_48 = arith.constant 0 : index
      %c0_49 = arith.constant 0 : index
      %85 = vector.load %arg9[%c11, %c0_48, %c0_49] : memref<25x16x8xf32, #tpu.memory_space<vmem>>, vector<1x16x8xf32>
      %86 = vector.shape_cast %85 : vector<1x16x8xf32> to vector<16x8xf32>
      %87 = vector.shape_cast %84 : vector<16x8xf32> to vector<1x16x8xf32>
      tpu.vector_store %arg9[%c11, %c0_48, %c0_49], %87 {strides = array<i32>} : memref<25x16x8xf32, #tpu.memory_space<vmem>>, vector<1x16x8xf32>,
      %88 = vector.extract_strided_slice %39 {offsets = [0, 96], sizes = [16, 8], strides = [1, 1]} : vector<16x256xf32> to vector<16x8xf32>
      %c12 = arith.constant 12 : index
      %c0_50 = arith.constant 0 : index
      %c0_51 = arith.constant 0 : index
      %89 = vector.load %arg9[%c12, %c0_50, %c0_51] : memref<25x16x8xf32, #tpu.memory_space<vmem>>, vector<1x16x8xf32>
      %90 = vector.shape_cast %89 : vector<1x16x8xf32> to vector<16x8xf32>
      %91 = vector.shape_cast %88 : vector<16x8xf32> to vector<1x16x8xf32>
      tpu.vector_store %arg9[%c12, %c0_50, %c0_51], %91 {strides = array<i32>} : memref<25x16x8xf32, #tpu.memory_space<vmem>>, vector<1x16x8xf32>,
      %92 = vector.extract_strided_slice %39 {offsets = [0, 104], sizes = [16, 8], strides = [1, 1]} : vector<16x256xf32> to vector<16x8xf32>
      %c13 = arith.constant 13 : index
      %c0_52 = arith.constant 0 : index
      %c0_53 = arith.constant 0 : index
      %93 = vector.load %arg9[%c13, %c0_52, %c0_53] : memref<25x16x8xf32, #tpu.memory_space<vmem>>, vector<1x16x8xf32>
      %94 = vector.shape_cast %93 : vector<1x16x8xf32> to vector<16x8xf32>
      %95 = vector.shape_cast %92 : vector<16x8xf32> to vector<1x16x8xf32>
      tpu.vector_store %arg9[%c13, %c0_52, %c0_53], %95 {strides = array<i32>} : memref<25x16x8xf32, #tpu.memory_space<vmem>>, vector<1x16x8xf32>,
      %96 = vector.extract_strided_slice %39 {offsets = [0, 112], sizes = [16, 8], strides = [1, 1]} : vector<16x256xf32> to vector<16x8xf32>
      %c14 = arith.constant 14 : index
      %c0_54 = arith.constant 0 : index
      %c0_55 = arith.constant 0 : index
      %97 = vector.load %arg9[%c14, %c0_54, %c0_55] : memref<25x16x8xf32, #tpu.memory_space<vmem>>, vector<1x16x8xf32>
      %98 = vector.shape_cast %97 : vector<1x16x8xf32> to vector<16x8xf32>
      %99 = vector.shape_cast %96 : vector<16x8xf32> to vector<1x16x8xf32>
      tpu.vector_store %arg9[%c14, %c0_54, %c0_55], %99 {strides = array<i32>} : memref<25x16x8xf32, #tpu.memory_space<vmem>>, vector<1x16x8xf32>,
      %100 = vector.extract_strided_slice %39 {offsets = [0, 120], sizes = [16, 8], strides = [1, 1]} : vector<16x256xf32> to vector<16x8xf32>
      %c15 = arith.constant 15 : index
      %c0_56 = arith.constant 0 : index
      %c0_57 = arith.constant 0 : index
      %101 = vector.load %arg9[%c15, %c0_56, %c0_57] : memref<25x16x8xf32, #tpu.memory_space<vmem>>, vector<1x16x8xf32>
      %102 = vector.shape_cast %101 : vector<1x16x8xf32> to vector<16x8xf32>
      %103 = vector.shape_cast %100 : vector<16x8xf32> to vector<1x16x8xf32>
      tpu.vector_store %arg9[%c15, %c0_56, %c0_57], %103 {strides = array<i32>} : memref<25x16x8xf32, #tpu.memory_space<vmem>>, vector<1x16x8xf32>,
      %104 = vector.extract_strided_slice %39 {offsets = [0, 128], sizes = [16, 8], strides = [1, 1]} : vector<16x256xf32> to vector<16x8xf32>
      %c16 = arith.constant 16 : index
      %c0_58 = arith.constant 0 : index
      %c0_59 = arith.constant 0 : index
      %105 = vector.load %arg9[%c16, %c0_58, %c0_59] : memref<25x16x8xf32, #tpu.memory_space<vmem>>, vector<1x16x8xf32>
      %106 = vector.shape_cast %105 : vector<1x16x8xf32> to vector<16x8xf32>
      %107 = vector.shape_cast %104 : vector<16x8xf32> to vector<1x16x8xf32>
      tpu.vector_store %arg9[%c16, %c0_58, %c0_59], %107 {strides = array<i32>} : memref<25x16x8xf32, #tpu.memory_space<vmem>>, vector<1x16x8xf32>,
      %108 = vector.extract_strided_slice %39 {offsets = [0, 136], sizes = [16, 8], strides = [1, 1]} : vector<16x256xf32> to vector<16x8xf32>
      %c17 = arith.constant 17 : index
      %c0_60 = arith.constant 0 : index
      %c0_61 = arith.constant 0 : index
      %109 = vector.load %arg9[%c17, %c0_60, %c0_61] : memref<25x16x8xf32, #tpu.memory_space<vmem>>, vector<1x16x8xf32>
      %110 = vector.shape_cast %109 : vector<1x16x8xf32> to vector<16x8xf32>
      %111 = vector.shape_cast %108 : vector<16x8xf32> to vector<1x16x8xf32>
      tpu.vector_store %arg9[%c17, %c0_60, %c0_61], %111 {strides = array<i32>} : memref<25x16x8xf32, #tpu.memory_space<vmem>>, vector<1x16x8xf32>,
      %112 = vector.extract_strided_slice %39 {offsets = [0, 144], sizes = [16, 8], strides = [1, 1]} : vector<16x256xf32> to vector<16x8xf32>
      %c18 = arith.constant 18 : index
      %c0_62 = arith.constant 0 : index
      %c0_63 = arith.constant 0 : index
      %113 = vector.load %arg9[%c18, %c0_62, %c0_63] : memref<25x16x8xf32, #tpu.memory_space<vmem>>, vector<1x16x8xf32>
      %114 = vector.shape_cast %113 : vector<1x16x8xf32> to vector<16x8xf32>
      %115 = vector.shape_cast %112 : vector<16x8xf32> to vector<1x16x8xf32>
      tpu.vector_store %arg9[%c18, %c0_62, %c0_63], %115 {strides = array<i32>} : memref<25x16x8xf32, #tpu.memory_space<vmem>>, vector<1x16x8xf32>,
      %116 = vector.extract_strided_slice %39 {offsets = [0, 152], sizes = [16, 8], strides = [1, 1]} : vector<16x256xf32> to vector<16x8xf32>
      %c19 = arith.constant 19 : index
      %c0_64 = arith.constant 0 : index
      %c0_65 = arith.constant 0 : index
      %117 = vector.load %arg9[%c19, %c0_64, %c0_65] : memref<25x16x8xf32, #tpu.memory_space<vmem>>, vector<1x16x8xf32>
      %118 = vector.shape_cast %117 : vector<1x16x8xf32> to vector<16x8xf32>
      %119 = vector.shape_cast %116 : vector<16x8xf32> to vector<1x16x8xf32>
      tpu.vector_store %arg9[%c19, %c0_64, %c0_65], %119 {strides = array<i32>} : memref<25x16x8xf32, #tpu.memory_space<vmem>>, vector<1x16x8xf32>,
      %120 = vector.extract_strided_slice %39 {offsets = [0, 160], sizes = [16, 8], strides = [1, 1]} : vector<16x256xf32> to vector<16x8xf32>
      %c20 = arith.constant 20 : index
      %c0_66 = arith.constant 0 : index
      %c0_67 = arith.constant 0 : index
      %121 = vector.load %arg9[%c20, %c0_66, %c0_67] : memref<25x16x8xf32, #tpu.memory_space<vmem>>, vector<1x16x8xf32>
      %122 = vector.shape_cast %121 : vector<1x16x8xf32> to vector<16x8xf32>
      %123 = vector.shape_cast %120 : vector<16x8xf32> to vector<1x16x8xf32>
      tpu.vector_store %arg9[%c20, %c0_66, %c0_67], %123 {strides = array<i32>} : memref<25x16x8xf32, #tpu.memory_space<vmem>>, vector<1x16x8xf32>,
      %124 = vector.extract_strided_slice %39 {offsets = [0, 168], sizes = [16, 8], strides = [1, 1]} : vector<16x256xf32> to vector<16x8xf32>
      %c21 = arith.constant 21 : index
      %c0_68 = arith.constant 0 : index
      %c0_69 = arith.constant 0 : index
      %125 = vector.load %arg9[%c21, %c0_68, %c0_69] : memref<25x16x8xf32, #tpu.memory_space<vmem>>, vector<1x16x8xf32>
      %126 = vector.shape_cast %125 : vector<1x16x8xf32> to vector<16x8xf32>
      %127 = vector.shape_cast %124 : vector<16x8xf32> to vector<1x16x8xf32>
      tpu.vector_store %arg9[%c21, %c0_68, %c0_69], %127 {strides = array<i32>} : memref<25x16x8xf32, #tpu.memory_space<vmem>>, vector<1x16x8xf32>,
      %128 = vector.extract_strided_slice %39 {offsets = [0, 176], sizes = [16, 8], strides = [1, 1]} : vector<16x256xf32> to vector<16x8xf32>
      %c22 = arith.constant 22 : index
      %c0_70 = arith.constant 0 : index
      %c0_71 = arith.constant 0 : index
      %129 = vector.load %arg9[%c22, %c0_70, %c0_71] : memref<25x16x8xf32, #tpu.memory_space<vmem>>, vector<1x16x8xf32>
      %130 = vector.shape_cast %129 : vector<1x16x8xf32> to vector<16x8xf32>
      %131 = vector.shape_cast %128 : vector<16x8xf32> to vector<1x16x8xf32>
      tpu.vector_store %arg9[%c22, %c0_70, %c0_71], %131 {strides = array<i32>} : memref<25x16x8xf32, #tpu.memory_space<vmem>>, vector<1x16x8xf32>,
      %132 = vector.extract_strided_slice %39 {offsets = [0, 184], sizes = [16, 8], strides = [1, 1]} : vector<16x256xf32> to vector<16x8xf32>
      %c23 = arith.constant 23 : index
      %c0_72 = arith.constant 0 : index
      %c0_73 = arith.constant 0 : index
      %133 = vector.load %arg9[%c23, %c0_72, %c0_73] : memref<25x16x8xf32, #tpu.memory_space<vmem>>, vector<1x16x8xf32>
      %134 = vector.shape_cast %133 : vector<1x16x8xf32> to vector<16x8xf32>
      %135 = vector.shape_cast %132 : vector<16x8xf32> to vector<1x16x8xf32>
      tpu.vector_store %arg9[%c23, %c0_72, %c0_73], %135 {strides = array<i32>} : memref<25x16x8xf32, #tpu.memory_space<vmem>>, vector<1x16x8xf32>,
      %136 = vector.extract_strided_slice %39 {offsets = [0, 192], sizes = [16, 8], strides = [1, 1]} : vector<16x256xf32> to vector<16x8xf32>
      %c24 = arith.constant 24 : index
      %c0_74 = arith.constant 0 : index
      %c0_75 = arith.constant 0 : index
      %137 = vector.load %arg9[%c24, %c0_74, %c0_75] : memref<25x16x8xf32, #tpu.memory_space<vmem>>, vector<1x16x8xf32>
      %138 = vector.shape_cast %137 : vector<1x16x8xf32> to vector<16x8xf32>
      %139 = vector.shape_cast %136 : vector<16x8xf32> to vector<1x16x8xf32>
      tpu.vector_store %arg9[%c24, %c0_74, %c0_75], %139 {strides = array<i32>} : memref<25x16x8xf32, #tpu.memory_space<vmem>>, vector<1x16x8xf32>,
    } else {
    }
    %c0 = arith.constant 0 : index
    %c0_1 = arith.constant 0 : index
    %3 = vector.load %arg8[%c0, %c0_1] : memref<16x4xf32, #tpu.memory_space<vmem>>, vector<16x4xf32>
    %c0_2 = arith.constant 0 : index
    %c0_3 = arith.constant 0 : index
    %4 = vector.load %arg4[%c0_2, %c0_3] : memref<4x128xf32, #tpu.memory_space<vmem>>, vector<4x128xf32>
    %cst = arith.constant dense<0.000000e+00> : vector<16x128xf32>
    %5 = tpu.matmul %3, %4, %cst {dimension_numbers = #tpu.dot_dimension_numbers<[1], [0], [0], [1], [0, 0, 1, 1], [], []>} : vector<16x4xf32>, vector<4x128xf32>, vector<16x128xf32> -> vector<16x128xf32>
    %c0_i32_4 = arith.constant 0 : i32
    %c25_i32 = arith.constant 25 : i32
    %6 = arith.addi %c0_i32_4, %c25_i32 : i32
    %c1_i32 = arith.constant 1 : i32
    %7 = scf.for %arg10 = %c0_i32_4 to %6 step %c1_i32 iter_args(%arg11 = %5) -> (vector<16x128xf32>)  : i32 {
      %c8_i32 = arith.constant 8 : i32
      %9 = arith.muli %arg10, %c8_i32 : i32
      %10 = tpu.assume_multiple %9, 8 : i32
      %11 = arith.index_cast %arg10 : i32 to index
      %c0_8 = arith.constant 0 : index
      %c0_9 = arith.constant 0 : index
      %12 = vector.load %arg9[%11, %c0_8, %c0_9] : memref<25x16x8xf32, #tpu.memory_space<vmem>>, vector<1x16x8xf32>
      %13 = vector.shape_cast %12 : vector<1x16x8xf32> to vector<16x8xf32>
      %14 = arith.index_cast %10 : i32 to index
      %c0_10 = arith.constant 0 : index
      %15 = vector.load %arg6[%14, %c0_10] : memref<256x128xf32, #tpu.memory_space<vmem>>, vector<8x128xf32>
      %16 = vector.extract_strided_slice %13 {offsets = [0, 0], sizes = [16, 1], strides = [1, 1]} : vector<16x8xf32> to vector<16x1xf32>
      %17 = vector.extract_strided_slice %15 {offsets = [0, 0], sizes = [1, 128], strides = [1, 1]} : vector<8x128xf32> to vector<1x128xf32>
      %18 = vector.broadcast %16 : vector<16x1xf32> to vector<16x128xf32>
      %19 = vector.broadcast %17 : vector<1x128xf32> to vector<16x128xf32>
      %20 = arith.subf %18, %19 : vector<16x128xf32>
      %21 = math.absf %20 : vector<16x128xf32>
      %22 = arith.addf %arg11, %21 : vector<16x128xf32>
      %23 = vector.extract_strided_slice %13 {offsets = [0, 1], sizes = [16, 1], strides = [1, 1]} : vector<16x8xf32> to vector<16x1xf32>
      %24 = vector.extract_strided_slice %15 {offsets = [1, 0], sizes = [1, 128], strides = [1, 1]} : vector<8x128xf32> to vector<1x128xf32>
      %25 = vector.broadcast %23 : vector<16x1xf32> to vector<16x128xf32>
      %26 = vector.broadcast %24 : vector<1x128xf32> to vector<16x128xf32>
      %27 = arith.subf %25, %26 : vector<16x128xf32>
      %28 = math.absf %27 : vector<16x128xf32>
      %29 = arith.addf %22, %28 : vector<16x128xf32>
      %30 = vector.extract_strided_slice %13 {offsets = [0, 2], sizes = [16, 1], strides = [1, 1]} : vector<16x8xf32> to vector<16x1xf32>
      %31 = vector.extract_strided_slice %15 {offsets = [2, 0], sizes = [1, 128], strides = [1, 1]} : vector<8x128xf32> to vector<1x128xf32>
      %32 = vector.broadcast %30 : vector<16x1xf32> to vector<16x128xf32>
      %33 = vector.broadcast %31 : vector<1x128xf32> to vector<16x128xf32>
      %34 = arith.subf %32, %33 : vector<16x128xf32>
      %35 = math.absf %34 : vector<16x128xf32>
      %36 = arith.addf %29, %35 : vector<16x128xf32>
      %37 = vector.extract_strided_slice %13 {offsets = [0, 3], sizes = [16, 1], strides = [1, 1]} : vector<16x8xf32> to vector<16x1xf32>
      %38 = vector.extract_strided_slice %15 {offsets = [3, 0], sizes = [1, 128], strides = [1, 1]} : vector<8x128xf32> to vector<1x128xf32>
      %39 = vector.broadcast %37 : vector<16x1xf32> to vector<16x128xf32>
      %40 = vector.broadcast %38 : vector<1x128xf32> to vector<16x128xf32>
      %41 = arith.subf %39, %40 : vector<16x128xf32>
      %42 = math.absf %41 : vector<16x128xf32>
      %43 = arith.addf %36, %42 : vector<16x128xf32>
      %44 = vector.extract_strided_slice %13 {offsets = [0, 4], sizes = [16, 1], strides = [1, 1]} : vector<16x8xf32> to vector<16x1xf32>
      %45 = vector.extract_strided_slice %15 {offsets = [4, 0], sizes = [1, 128], strides = [1, 1]} : vector<8x128xf32> to vector<1x128xf32>
      %46 = vector.broadcast %44 : vector<16x1xf32> to vector<16x128xf32>
      %47 = vector.broadcast %45 : vector<1x128xf32> to vector<16x128xf32>
      %48 = arith.subf %46, %47 : vector<16x128xf32>
      %49 = math.absf %48 : vector<16x128xf32>
      %50 = arith.addf %43, %49 : vector<16x128xf32>
      %51 = vector.extract_strided_slice %13 {offsets = [0, 5], sizes = [16, 1], strides = [1, 1]} : vector<16x8xf32> to vector<16x1xf32>
      %52 = vector.extract_strided_slice %15 {offsets = [5, 0], sizes = [1, 128], strides = [1, 1]} : vector<8x128xf32> to vector<1x128xf32>
      %53 = vector.broadcast %51 : vector<16x1xf32> to vector<16x128xf32>
      %54 = vector.broadcast %52 : vector<1x128xf32> to vector<16x128xf32>
      %55 = arith.subf %53, %54 : vector<16x128xf32>
      %56 = math.absf %55 : vector<16x128xf32>
      %57 = arith.addf %50, %56 : vector<16x128xf32>
      %58 = vector.extract_strided_slice %13 {offsets = [0, 6], sizes = [16, 1], strides = [1, 1]} : vector<16x8xf32> to vector<16x1xf32>
      %59 = vector.extract_strided_slice %15 {offsets = [6, 0], sizes = [1, 128], strides = [1, 1]} : vector<8x128xf32> to vector<1x128xf32>
      %60 = vector.broadcast %58 : vector<16x1xf32> to vector<16x128xf32>
      %61 = vector.broadcast %59 : vector<1x128xf32> to vector<16x128xf32>
      %62 = arith.subf %60, %61 : vector<16x128xf32>
      %63 = math.absf %62 : vector<16x128xf32>
      %64 = arith.addf %57, %63 : vector<16x128xf32>
      %65 = vector.extract_strided_slice %13 {offsets = [0, 7], sizes = [16, 1], strides = [1, 1]} : vector<16x8xf32> to vector<16x1xf32>
      %66 = vector.extract_strided_slice %15 {offsets = [7, 0], sizes = [1, 128], strides = [1, 1]} : vector<8x128xf32> to vector<1x128xf32>
      %67 = vector.broadcast %65 : vector<16x1xf32> to vector<16x128xf32>
      %68 = vector.broadcast %66 : vector<1x128xf32> to vector<16x128xf32>
      %69 = arith.subf %67, %68 : vector<16x128xf32>
      %70 = math.absf %69 : vector<16x128xf32>
      %71 = arith.addf %64, %70 : vector<16x128xf32>
      scf.yield %71 : vector<16x128xf32>
    }
    %c25_i32_5 = arith.constant 25 : i32
    %c0_6 = arith.constant 0 : index
    %c0_7 = arith.constant 0 : index
    %8 = vector.load %arg7[%c0_6, %c0_7] : memref<16x128xf32, #tpu.memory_space<vmem>>, vector<16x128xf32>
    tpu.vector_store %arg7[%c0_6, %c0_7], %7 {strides = array<i32>} : memref<16x128xf32, #tpu.memory_space<vmem>>, vector<16x128xf32>,
    return
  }
  func.func @transform_0(%arg0: i32, %arg1: i32) -> (i32, i32) {
    %c0_i32 = arith.constant 0 : i32
    %c0_i32_0 = arith.constant 0 : i32
    return %arg0, %c0_i32 : i32, i32
  }
  func.func @transform_1(%arg0: i32, %arg1: i32) -> (i32, i32) {
    %c0_i32 = arith.constant 0 : i32
    %c0_i32_0 = arith.constant 0 : i32
    return %arg0, %c0_i32 : i32, i32
  }
  func.func @transform_2(%arg0: i32, %arg1: i32) -> (i32, i32) {
    %c0_i32 = arith.constant 0 : i32
    %c0_i32_0 = arith.constant 0 : i32
    return %c0_i32, %arg1 : i32, i32
  }
  func.func @transform_3(%arg0: i32, %arg1: i32) -> (i32, i32) {
    %c0_i32 = arith.constant 0 : i32
    %c0_i32_0 = arith.constant 0 : i32
    %c0_i32_1 = arith.constant 0 : i32
    return %c0_i32, %c0_i32_0 : i32, i32
  }
  func.func @transform_4(%arg0: i32, %arg1: i32) -> (i32, i32) {
    %c0_i32 = arith.constant 0 : i32
    %c0_i32_0 = arith.constant 0 : i32
    return %c0_i32, %arg1 : i32, i32
  }
  func.func @transform_5(%arg0: i32, %arg1: i32) -> (i32, i32) {
    %c0_i32 = arith.constant 0 : i32
    return %arg0, %arg1 : i32, i32
  }
}

</mosaic_0001>

<bundles_post_ra>
// kernel: tpu_custom_call.1
= control target key start
LH: loop header
LB: loop body
LE: loop exit
PB: predicated region body
PF: predicated region fallthrough
CT: control target
= control target key end

     0   :  { %10 = vsyncpa [#allocation5], 0  ;;  %s1025_s0 = inlined_call_operand.vmem [shape: f32[16,4], index: 0, kind: input, shape index: {}]   ;;  %s1026_s1 = inlined_call_operand.vmem [shape: f32[16,8], index: 1, kind: input, shape index: {}]   ;;  %s1027_s2 = inlined_call_operand.vmem [shape: f32[4,128], index: 2, kind: input, shape index: {}]   ;;  %s1028_s3 = inlined_call_operand.vmem [shape: f32[8,256], index: 3, kind: input, shape index: {}]   ;;  %s1029_s4 = inlined_call_operand.hbm [shape: f32[256,128], index: 4, kind: input, shape index: {}]   ;;  %s1030_s5 = inlined_call_operand.hbm [shape: f32[16,128], index: 5, kind: output, shape index: {}]  }
   0x1   :  { %11 = vsyncpa [#allocation6], 0  ;;  %s24_s20 = sshll.u32 %s1029_s4, 4  ;;  %s767_s21 = smov [#allocation4]   ;;  %s25_s20 = int_to_ptr.hbm [resolvable:$true] %s24_s20 }
   0x2   :  { %s26_s22 = sshll.u32 %s767_s21, 4  ;;  %s768_s23 = smov 128   ;;  %s27_s22 = int_to_ptr.vmem [resolvable:$true] %s26_s22 }
   0x3   :  { %s769_s24 = smov 8  }
   0x4   :  { %32 = dma.hbm_to_vmem [thread:$0]  %s25_s20, 4096, %s27_s22, [#allocation5], %s768_s23, %s768_s23, %s769_s24  }
   0x5   :  { %751 = dma.done.wait [#allocation5], 4096  }
   0x6   :  { %752 = vsyncadd [#allocation5], 4294963200  ;;  %vm120_vm0 = vcmask 64512   ;;  %v118_v0 = vld [vmem:[%s1028_s3] sm:$0xff]  ;;  %v119_v2 = vld [vmem:[%s1028_s3 + $0x8] sm:$0xff]  ;;  %s770_s7 = smov 104  }
   0x7   :  { %v116_v1 = vld [vmem:[%s1026_s1] sm:$0xff]  ;;  %142 = vmatpush.msra.mxu0 %v118_v0  ;;  %165 = vmatpush.msra.mxu1 %v119_v2  ;;  %v117_v3 = vld [vmem:[%s1026_s1 + $0x8] sm:$0xff]  ;;  %s771_s3 = smov 112   ;;  %s772_s8 = smov 120   ;;  %vm113_vm9 = vcmask 31744   ;;  %vm399_vm10 = vcmask 1043456  }
   0x8   :  { %601 = vmatmul.msk.f32.vlgmr.msra.gmra.mxu0 %vm120_vm0, %v116_v1  ;;  %603 = vmatmul.msk.f32.vlgmr.msra.gmra.mxu1 %vm120_vm0, %v116_v1  ;;  %s773_s1 = smov 88   ;;  %s774_s9 = smov 80   ;;  %v41_v6 = vld [vmem:[%s1025_s0] sm:$0xff]  ;;  %v42_v9 = vld [vmem:[%s1025_s0 + $0x8] sm:$0xff] }
   0x9   :  { %610 = vmatpush.msra.mxu3 %v118_v0  ;;  %s775_s10 = smov 96   ;;  %v599_v7 = vmul.f32 -1.442695, %v41_v6  ;;  %s776_s13 = smov 64   ;;  %v600_v11 = vmul.f32 -1.442695, %v42_v9 }
   0xa   :  { %602 = vmatmul.msk.f32.vlgmr.msra.gmra.mxu3 %vm120_vm0, %v117_v3  ;;  %s777_s14 = smov 56   ;;  %s778_s15 = smov 72   ;;  %v391_v61 = vld [vmem:[%s1027_s2] sm:$0xf] }
   0xb   :  { %661 = vpow2.f32 %v599_v7  ;;  %s779_s18 = smov 40   ;;  %s780_s19 = smov 32   ;;  %605 = vmatpush.msk.msra.mxu2 %vm399_vm10, %v391_v61 }
   0xc   :  { %663 = vpow2.f32 %v600_v11  ;;  %s781_s20 = smov 48   ;;  %s782_s0 = smov 16  }
   0xd   :  { %s783_s21 = smov 24   ;;  %s987_s2 = smov 0  }
  0x10   :  { %604 = vmatmul.msk.f32.gmra.mxu1 %vm120_vm0, %v117_v3 }
  0x11   :  { %v662_v10 = vpop.eup %661 }
  0x12   :  { %v49_v12 = vadd.f32 1.0, %v662_v10  ;;  %v664_v13 = vpop.eup %663 }
  0x13   :  { %v50_v15 = vadd.f32 1.0, %v664_v13 }
  0x14   :  { %665 = vrcp.f32 %v49_v12  ;;  %v62_v19 = vand.u32 2147483648, %v49_v12  ;;  %vm56_vm1 = vweird.f32 %v49_v12  ;;  %v60_v21 = vand.u32 2147483647, %v49_v12 }
  0x15   :  { %667 = vrcp.f32 %v50_v15  ;;  %v77_v32 = vand.u32 2147483648, %v50_v15  ;;  %vm71_vm5 = vweird.f32 %v50_v15  ;;  %v75_v34 = vand.u32 2147483647, %v50_v15 }
  0x16   :  { %v63_v23 = vor.u32 1.1754944e-38, %v62_v19  ;;  %vm61_vm4 = vcmp.eq.f32.partialorder %v60_v21, 8.507059e+37 }
  0x17   :  { %v78_v35 = vor.u32 1.1754944e-38, %v77_v32  ;;  %vm76_vm8 = vcmp.eq.f32.partialorder %v75_v34, 8.507059e+37 }
  0x1a   :  { %v666_v14 = vpop.eup %665 }
  0x1b   :  { %v52_v16 = vmul.f32 %v666_v14, %v49_v12  ;;  %vm57_vm2 = vweird.f32 %v666_v14  ;;  %v668_v22 = vpop.eup %667 }
  0x1c   :  { %vm58_vm3 = vmor %vm56_vm1, %vm57_vm2  ;;  %v67_v25 = vmul.f32 %v668_v22, %v50_v15  ;;  %vm72_vm6 = vweird.f32 %v668_v22 }
  0x1d   :  { %v53_v17 = vsub.f32 1.0, %v52_v16  ;;  %vm73_vm7 = vmor %vm71_vm5, %vm72_vm6 }
  0x1e   :  { %v68_v27 = vsub.f32 1.0, %v67_v25 }
  0x1f   :  { %v54_v18 = vmul.f32 %v666_v14, %v53_v17 }
  0x20   :  { %v69_v29 = vmul.f32 %v668_v22, %v68_v27 }
  0x21   :  { %v55_v20 = vadd.f32 %v666_v14, %v54_v18 }
  0x22   :  { %v70_v33 = vadd.f32 %v668_v22, %v69_v29 }
  0x23   :  { %v59_v24 = vsel %vm58_vm3, %v666_v14, %v55_v20 }
  0x24   :  { %v64_v26 = vsel %vm61_vm4, %v63_v23, %v59_v24  ;;  %v74_v36 = vsel %vm73_vm7, %v668_v22, %v70_v33 }
  0x25   :  { %v81_v28 = vsub.f32 1.0, %v64_v26  ;;  %v101_v31 = vadd.f32 1e-08, %v64_v26  ;;  %v79_v37 = vsel %vm76_vm8, %v78_v35, %v74_v36  ;;  %v83_v42 = vmul.f32 %v64_v26, %v64_v26 }
  0x26   :  { %v82_v38 = vsub.f32 1.0, %v79_v37  ;;  %v102_v40 = vadd.f32 1e-08, %v79_v37  ;;  %v84_v55 = vmul.f32 %v79_v37, %v79_v37 }
  0x27   :  { %v89_v30 = vadd.f32 1e-08, %v81_v28  ;;  %v85_v43 = vmul.f32 %v81_v28, %v81_v28  ;;  %v87_v46 = vmul.f32 0.75, %v83_v42 }
  0x28   :  { %v90_v39 = vadd.f32 1e-08, %v82_v38  ;;  %v86_v56 = vmul.f32 %v82_v38, %v82_v38  ;;  %v88_v62 = vmul.f32 0.75, %v84_v55 }
  0x29   :  { %669 = vlog2.f32 %v89_v30  ;;  %v99_v47 = vmul.f32 0.25, %v85_v43 }
  0x2a   :  { %671 = vlog2.f32 %v101_v31  ;;  %v100_v0 = vmul.f32 0.25, %v86_v56 }
  0x2b   :  { %673 = vlog2.f32 %v90_v39 }
  0x2c   :  { %675 = vlog2.f32 %v102_v40 }
  0x2f   :  { %v670_v41 = vpop.eup %669 }
  0x30   :  { %v672_v44 = vpop.eup %671  ;;  %v92_v45 = vmul.f32 0.6931472, %v670_v41 }
  0x31   :  { %v104_v48 = vmul.f32 0.6931472, %v672_v44  ;;  %v674_v53 = vpop.eup %673 }
  0x32   :  { %v95_v49 = vsub.f32 0.0, %v92_v45  ;;  %v676_v54 = vpop.eup %675  ;;  %v94_v57 = vmul.f32 0.6931472, %v674_v53 }
  0x33   :  { %v107_v50 = vsub.f32 0.0, %v104_v48  ;;  %v106_v59 = vmul.f32 0.6931472, %v676_v54 }
  0x34   :  { %v97_v51 = vmul.f32 %v95_v49, %v87_v46  ;;  %v96_v63 = vsub.f32 0.0, %v94_v57 }
  0x35   :  { %v109_v52 = vmul.f32 %v107_v50, %v99_v47  ;;  %v108_v1 = vsub.f32 0.0, %v106_v59 }
  0x36   :  { %v98_v2 = vmul.f32 %v96_v63, %v88_v62 }
  0x37   :  { %v111_v58 = vsub.f32 %v109_v52, %v97_v51  ;;  %v110_v3 = vmul.f32 %v108_v1, %v100_v0 }
  0x39   :  { %114 = vst.msk [vmem:[#allocation2] sm:$0xff] %vm113_vm9, %v111_v58 }
  0x40   :  { %v389_v6 = vld [vmem:[#allocation2] sm:$0xff] }
  0x41   :  { %606 = vmatmul.msk.f32.vlgmr.msra.gmra.mxu2 %vm113_vm9, %v389_v6 }
  0x85   :  { %v144_v4 = vpop.f32.mrf.mxu0  ;;  %v849_v5 = vpop.f32.mrf.mxu1 }
  0x86   :  { %173 = vst.msk [vmem:[#allocation3] sm:$0xff] %vm120_vm0, %v144_v4  ;;  %195 = vrot.lane.b32.xlu2 %v144_v4, %s770_s7  ;;  %186 = vrot.lane.b32.xlu1 %v144_v4, %s771_s3 }
  0x87   :  { %177 = vrot.lane.b32.xlu0 %v144_v4, %s772_s8  ;;  %313 = vst.msk [vmem:[#allocation3 + $0x100] sm:$0xff] %vm120_vm0, %v849_v5 }
  0x8d   :  { %v862_v8 = vpop.f32.mrf.mxu3  ;;  %v170_v60 = vpop.f32.mrf.mxu1 }
  0x8e   :  { %213 = vrot.lane.b32.xlu2 %v144_v4, %s773_s1  ;;  %222 = vrot.lane.b32.xlu1 %v144_v4, %s774_s9  ;;  %174 = vst.msk [vmem:[#allocation3 + $0x8] sm:$0xff] %vm120_vm0, %v862_v8 }
  0x8f   :  { %204 = vrot.lane.b32.xlu0 %v144_v4, %s775_s10  ;;  %314 = vst.msk [vmem:[#allocation3 + $0x108] sm:$0xff] %vm120_vm0, %v170_v60 }
  0x96   :  { %240 = vrot.lane.b32.xlu2 %v144_v4, %s776_s13  ;;  %249 = vrot.lane.b32.xlu1 %v144_v4, %s777_s14 }
  0x97   :  { %231 = vrot.lane.b32.xlu0 %v144_v4, %s778_s15 }
  0x9e   :  { %267 = vrot.lane.b32.xlu2 %v144_v4, %s779_s18  ;;  %276 = vrot.lane.b32.xlu1 %v144_v4, %s780_s19 }
  0x9f   :  { %258 = vrot.lane.b32.xlu0 %v144_v4, %s781_s20 }
  0xa6   :  { %294 = vrot.lane.b32.xlu2 %v144_v4, %s782_s0  ;;  %303 = vrot.lane.b32.xlu1 %v144_v4, %s769_s24 }
  0xa7   :  { %285 = vrot.lane.b32.xlu0 %v144_v4, %s783_s21  ;;  %v112_v4 = vsub.f32 %v110_v3, %v98_v2 }
  0xa9   :  { %115 = vst.msk [vmem:[#allocation2 + $0x8] sm:$0xff] %vm113_vm9, %v112_v4 }
  0xae   :  { %326 = vrot.lane.b32.xlu2 %v849_v5, %s771_s3  ;;  %335 = vrot.lane.b32.xlu1 %v849_v5, %s770_s7 }
  0xaf   :  { %317 = vrot.lane.b32.xlu0 %v849_v5, %s772_s8 }
  0xb0   :  { %v390_v7 = vld [vmem:[#allocation2 + $0x8] sm:$0xff] }
  0xb1   :  { %607 = vmatmul.msk.f32.gmra.mxu2 %vm113_vm9, %v390_v7 }
  0xb6   :  { %353 = vrot.lane.b32.xlu2 %v849_v5, %s773_s1  ;;  %362 = vrot.lane.b32.xlu1 %v849_v5, %s774_s9 }
  0xb7   :  { %344 = vrot.lane.b32.xlu0 %v849_v5, %s775_s10 }
  0xbe   :  { %197 = vrot.lane.b32.xlu2 %v862_v8, %s770_s7  ;;  %188 = vrot.lane.b32.xlu1 %v862_v8, %s771_s3 }
  0xbf   :  { %371 = vrot.lane.b32.xlu0 %v849_v5, %s778_s15 }
  0xc4   :  { %v420_v43 = vpop.f32.mrf.mxu2  }
  0xc6   :  { %224 = vrot.lane.b32.xlu2 %v862_v8, %s774_s9  ;;  %206 = vrot.lane.b32.xlu1 %v862_v8, %s775_s10 }
  0xc7   :  { %179 = vrot.lane.b32.xlu0 %v862_v8, %s772_s8 }
  0xce   :  { %251 = vrot.lane.b32.xlu2 %v862_v8, %s777_s14  ;;  %233 = vrot.lane.b32.xlu1 %v862_v8, %s778_s15 }
  0xcf   :  { %215 = vrot.lane.b32.xlu0 %v862_v8, %s773_s1 }
  0xd6   :  { %278 = vrot.lane.b32.xlu2 %v862_v8, %s780_s19  ;;  %260 = vrot.lane.b32.xlu1 %v862_v8, %s781_s20 }
  0xd7   :  { %242 = vrot.lane.b32.xlu0 %v862_v8, %s776_s13 }
  0xde   :  { %305 = vrot.lane.b32.xlu2 %v862_v8, %s769_s24  ;;  %287 = vrot.lane.b32.xlu1 %v862_v8, %s783_s21 }
  0xdf   :  { %269 = vrot.lane.b32.xlu0 %v862_v8, %s779_s18 }
  0xe0   :  { %v196_v9 = vpop.permute.xlu2 %195 }
  0xe1   :  { %202 = vst.msk [vmem:[#allocation3 + $0x30] sm:$0xff] %vm120_vm0, %v196_v9 }
  0xe6   :  { %337 = vrot.lane.b32.xlu2 %v170_v60, %s770_s7  ;;  %319 = vrot.lane.b32.xlu1 %v170_v60, %s772_s8 }
  0xe7   :  { %296 = vrot.lane.b32.xlu0 %v862_v8, %s782_s0 }
  0xe8   :  { %v214_v10 = vpop.permute.xlu2 %213 }
  0xe9   :  { %220 = vst.msk [vmem:[#allocation3 + $0x50] sm:$0xff] %vm120_vm0, %v214_v10 }
  0xee   :  { %364 = vrot.lane.b32.xlu2 %v170_v60, %s774_s9  ;;  %346 = vrot.lane.b32.xlu1 %v170_v60, %s775_s10 }
  0xef   :  { %328 = vrot.lane.b32.xlu0 %v170_v60, %s771_s3 }
  0xf0   :  { %v241_v11 = vpop.permute.xlu2 %240 }
  0xf1   :  { %247 = vst.msk [vmem:[#allocation3 + $0x80] sm:$0xff] %vm120_vm0, %v241_v11 }
  0xf6   :  { %380 = vrot.lane.b32.xlu2 %v849_v5, %s776_s13  ;;  %373 = vrot.lane.b32.xlu1 %v170_v60, %s778_s15 }
  0xf7   :  { %355 = vrot.lane.b32.xlu0 %v170_v60, %s773_s1 }
  0xf8   :  { %v268_v8 = vpop.permute.xlu2 %267  ;;  %v187_v12 = vpop.permute.xlu1 %186 }
  0xf9   :  { %274 = vst.msk [vmem:[#allocation3 + $0xb0] sm:$0xff] %vm120_vm0, %v268_v8  ;;  %v178_v13 = vpop.permute.xlu0 %177 }
  0xfa   :  { %193 = vst.msk [vmem:[#allocation3 + $0x20] sm:$0xff] %vm120_vm0, %v187_v12 }
  0xfb   :  { %184 = vst.msk [vmem:[#allocation3 + $0x10] sm:$0xff] %vm120_vm0, %v178_v13 }
  0xff   :  { %382 = vrot.lane.b32.xlu0 %v170_v60, %s776_s13 }
 0x100   :  { %v295_v14 = vpop.permute.xlu2 %294  ;;  %v223_v15 = vpop.permute.xlu1 %222 }
 0x101   :  { %301 = vst.msk [vmem:[#allocation3 + $0xe0] sm:$0xff] %vm120_vm0, %v295_v14  ;;  %v205_v5 = vpop.permute.xlu0 %204 }
 0x102   :  { %229 = vst.msk [vmem:[#allocation3 + $0x60] sm:$0xff] %vm120_vm0, %v223_v15 }
 0x103   :  { %211 = vst.msk [vmem:[#allocation3 + $0x40] sm:$0xff] %vm120_vm0, %v205_v5 }
 0x108   :  { %v327_v16 = vpop.permute.xlu2 %326  ;;  %v250_v17 = vpop.permute.xlu1 %249 }
 0x109   :  { %333 = vst.msk [vmem:[#allocation3 + $0x120] sm:$0xff] %vm120_vm0, %v327_v16  ;;  %v232_v18 = vpop.permute.xlu0 %231 }
 0x10a   :  { %256 = vst.msk [vmem:[#allocation3 + $0x90] sm:$0xff] %vm120_vm0, %v250_v17 }
 0x10b   :  { %238 = vst.msk [vmem:[#allocation3 + $0x70] sm:$0xff] %vm120_vm0, %v232_v18 }
 0x110   :  { %v354_v19 = vpop.permute.xlu2 %353  ;;  %v277_v20 = vpop.permute.xlu1 %276 }
 0x111   :  { %360 = vst.msk [vmem:[#allocation3 + $0x150] sm:$0xff] %vm120_vm0, %v354_v19  ;;  %v259_v21 = vpop.permute.xlu0 %258 }
 0x112   :  { %283 = vst.msk [vmem:[#allocation3 + $0xc0] sm:$0xff] %vm120_vm0, %v277_v20 }
 0x113   :  { %265 = vst.msk [vmem:[#allocation3 + $0xa0] sm:$0xff] %vm120_vm0, %v259_v21 }
 0x118   :  { %v198_v22 = vpop.permute.xlu2 %197  ;;  %v304_v23 = vpop.permute.xlu1 %303 }
 0x119   :  { %203 = vst.msk [vmem:[#allocation3 + $0x38] sm:$0xff] %vm120_vm0, %v198_v22  ;;  %v286_v24 = vpop.permute.xlu0 %285 }
 0x11a   :  { %310 = vst.msk [vmem:[#allocation3 + $0xf0] sm:$0xff] %vm120_vm0, %v304_v23 }
 0x11b   :  { %292 = vst.msk [vmem:[#allocation3 + $0xd0] sm:$0xff] %vm120_vm0, %v286_v24 }
 0x120   :  { %v225_v25 = vpop.permute.xlu2 %224  ;;  %v336_v26 = vpop.permute.xlu1 %335 }
 0x121   :  { %230 = vst.msk [vmem:[#allocation3 + $0x68] sm:$0xff] %vm120_vm0, %v225_v25  ;;  %v318_v27 = vpop.permute.xlu0 %317 }
 0x122   :  { %342 = vst.msk [vmem:[#allocation3 + $0x130] sm:$0xff] %vm120_vm0, %v336_v26 }
 0x123   :  { %324 = vst.msk [vmem:[#allocation3 + $0x110] sm:$0xff] %vm120_vm0, %v318_v27 }
 0x128   :  { %v252_v28 = vpop.permute.xlu2 %251  ;;  %v363_v29 = vpop.permute.xlu1 %362 }
 0x129   :  { %257 = vst.msk [vmem:[#allocation3 + $0x98] sm:$0xff] %vm120_vm0, %v252_v28  ;;  %v345_v30 = vpop.permute.xlu0 %344 }
 0x12a   :  { %369 = vst.msk [vmem:[#allocation3 + $0x160] sm:$0xff] %vm120_vm0, %v363_v29 }
 0x12b   :  { %351 = vst.msk [vmem:[#allocation3 + $0x140] sm:$0xff] %vm120_vm0, %v345_v30 }
 0x130   :  { %v279_v31 = vpop.permute.xlu2 %278  ;;  %v189_v32 = vpop.permute.xlu1 %188 }
 0x131   :  { %284 = vst.msk [vmem:[#allocation3 + $0xc8] sm:$0xff] %vm120_vm0, %v279_v31  ;;  %v372_v33 = vpop.permute.xlu0 %371 }
 0x132   :  { %194 = vst.msk [vmem:[#allocation3 + $0x28] sm:$0xff] %vm120_vm0, %v189_v32 }
 0x133   :  { %378 = vst.msk [vmem:[#allocation3 + $0x170] sm:$0xff] %vm120_vm0, %v372_v33 }
 0x134   :  { %v423_v47 = vpop.f32.mrf.mxu2  }
 0x138   :  { %v306_v34 = vpop.permute.xlu2 %305  ;;  %v207_v35 = vpop.permute.xlu1 %206 }
 0x139   :  { %311 = vst.msk [vmem:[#allocation3 + $0xf8] sm:$0xff] %vm120_vm0, %v306_v34  ;;  %v180_v36 = vpop.permute.xlu0 %179 }
 0x13a   :  { %212 = vst.msk [vmem:[#allocation3 + $0x48] sm:$0xff] %vm120_vm0, %v207_v35 }
 0x13b   :  { %185 = vst.msk [vmem:[#allocation3 + $0x18] sm:$0xff] %vm120_vm0, %v180_v36 }
 0x140   :  { %v338_v37 = vpop.permute.xlu2 %337  ;;  %v234_v38 = vpop.permute.xlu1 %233 }
 0x141   :  { %343 = vst.msk [vmem:[#allocation3 + $0x138] sm:$0xff] %vm120_vm0, %v338_v37  ;;  %v216_v39 = vpop.permute.xlu0 %215 }
 0x142   :  { %239 = vst.msk [vmem:[#allocation3 + $0x78] sm:$0xff] %vm120_vm0, %v234_v38 }
 0x143   :  { %221 = vst.msk [vmem:[#allocation3 + $0x58] sm:$0xff] %vm120_vm0, %v216_v39 }
 0x148   :  { %v365_v40 = vpop.permute.xlu2 %364  ;;  %v261_v41 = vpop.permute.xlu1 %260 }
 0x149   :  { %370 = vst.msk [vmem:[#allocation3 + $0x168] sm:$0xff] %vm120_vm0, %v365_v40  ;;  %v243_v42 = vpop.permute.xlu0 %242 }
 0x14a   :  { %266 = vst.msk [vmem:[#allocation3 + $0xa8] sm:$0xff] %vm120_vm0, %v261_v41 }
 0x14b   :  { %248 = vst.msk [vmem:[#allocation3 + $0x88] sm:$0xff] %vm120_vm0, %v243_v42 }
 0x150   :  { %v381_v44 = vpop.permute.xlu2 %380  ;;  %v288_v45 = vpop.permute.xlu1 %287 }
 0x151   :  { %387 = vst.msk [vmem:[#allocation3 + $0x180] sm:$0xff] %vm120_vm0, %v381_v44  ;;  %v270_v46 = vpop.permute.xlu0 %269 }
 0x152   :  { %293 = vst.msk [vmem:[#allocation3 + $0xd8] sm:$0xff] %vm120_vm0, %v288_v45 }
 0x153   :  { %275 = vst.msk [vmem:[#allocation3 + $0xb8] sm:$0xff] %vm120_vm0, %v270_v46 }
 0x158   :  { %v320_v48 = vpop.permute.xlu1 %319 }
 0x159   :  { %325 = vst.msk [vmem:[#allocation3 + $0x118] sm:$0xff] %vm120_vm0, %v320_v48  ;;  %v297_v49 = vpop.permute.xlu0 %296 }
 0x15a   :  { %302 = vst.msk [vmem:[#allocation3 + $0xe8] sm:$0xff] %vm120_vm0, %v297_v49 }
 0x160   :  { %v347_v50 = vpop.permute.xlu1 %346 }
 0x161   :  { %352 = vst.msk [vmem:[#allocation3 + $0x148] sm:$0xff] %vm120_vm0, %v347_v50  ;;  %v329_v51 = vpop.permute.xlu0 %328 }
 0x162   :  { %334 = vst.msk [vmem:[#allocation3 + $0x128] sm:$0xff] %vm120_vm0, %v329_v51 }
 0x168   :  { %v374_v52 = vpop.permute.xlu1 %373 }
 0x169   :  { %379 = vst.msk [vmem:[#allocation3 + $0x178] sm:$0xff] %vm120_vm0, %v374_v52  ;;  %v356_v53 = vpop.permute.xlu0 %355 }
 0x16a   :  { %361 = vst.msk [vmem:[#allocation3 + $0x158] sm:$0xff] %vm120_vm0, %v356_v53 }
 0x171   :  { %v383_v54 = vpop.permute.xlu0 %382 }
 0x172   :  { %388 = vst.msk [vmem:[#allocation3 + $0x188] sm:$0xff] %vm120_vm0, %v383_v54 }
 0x173 LB: > { %v784_v55 = vmov 1   ;;  %v785_v56 = vmov 0   ;;  %s609_s26 = sshll.u32 %s765_s2, 4  ;;  %v786_v57 = vmov 2   ;;  %v787_v60 = vmov 3   ;;  %s608_s28 = sshll.u32 %s765_s2, 3  ;;  %s765_s2 = sphi %s987_s2, %s431_s2   ;;  %v761_v43 = vphi %v420_v43, %v1032_v43   ;;  %v757_v47 = vphi %v423_v47, %v1031_v47  }
 0x174   : > { %678 = vset.pattern.permute.xlu1 %v784_v55  ;;  %677 = vset.pattern.permute.xlu0 %v785_v56  ;;  %s436_s27 = scalar_lea.vmem [#allocation3], %s609_s26  ;;  %v788_v61 = vmov 4   ;;  %v789_v62 = vmov 5   ;;  %v790_v63 = vmov 6   ;;  %v791_v0 = vmov 7   ;;  %s439_s4 = scalar_lea.vmem [#allocation4], %s608_s28 }
 0x175   : > { %679 = vset.pattern.permute.xlu2 %v786_v57  ;;  %v1000_v9 = vld [vmem:[%s439_s4] sm:$0xff]  ;;  %s431_s2 = sadd.s32 1, %s765_s2  }
 0x176   : > { %v451_v8 = vperm.slane %v1000_v9, 0  ;;  %v466_v13 = vperm.slane %v1000_v9, 1  ;;  %v481_v5 = vperm.slane %v1000_v9, 2  ;;  %v496_v18 = vperm.slane %v1000_v9, 3  ;;  %p428_p0 = scmp.ge.s32.totalorder %s431_s2, 25  }
 0x177   : > { %v541_v27 = vperm.slane %v1000_v9, 6  ;;  %v511_v29 = vperm.slane %v1000_v9, 4  ;;  %v526_v31 = vperm.slane %v1000_v9, 5  ;;  %v556_v34 = vperm.slane %v1000_v9, 7  ;;  %s571_s6 = sshll.u32 (%p428_p0), %s1030_s5, 4  ;;  %s792_s7 = smov (%p428_p0), [#allocation7]   ;;  %s572_s6 = int_to_ptr.hbm [resolvable:$true] %s571_s6 }
 0x178   :  { %s569_s3 = sshll.u32 (%p428_p0), %s792_s7, 4  ;;  %s570_s3 = int_to_ptr.vmem [resolvable:$true] %s569_s3 }
 0x179   : > { %v437_v58 = vld [vmem:[%s436_s27] sm:$0xff]  ;;  %v438_v59 = vld [vmem:[%s436_s27 + $0x8] sm:$0xff] }
 0x17a   : > { %459 = vperm.xlu1 %678, %v437_v58   ;;  %443 = vperm.xlu0 %677, %v437_v58  }
 0x17b   : > { %474 = vperm.xlu2 %679, %v437_v58  }
 0x182   : > { %463 = vperm.xlu1 %678, %v438_v59   ;;  %448 = vperm.xlu0 %677, %v438_v59  }
 0x183   : > { %478 = vperm.xlu2 %679, %v438_v59  }
 0x18a   : > { %681 = vset.pattern.permute.xlu1 %v787_v60  ;;  %680 = vset.pattern.permute.xlu0 %v787_v60 }
 0x18b   : > { %493 = vperm.xlu1 %681, %v438_v59   ;;  %489 = vperm.xlu0 %680, %v437_v58  }
 0x18c   : > { %682 = vset.pattern.permute.xlu2 %v788_v61 }
 0x18d   : > { %504 = vperm.xlu2 %682, %v437_v58  }
 0x193   : > { %683 = vset.pattern.permute.xlu1 %v788_v61  ;;  %685 = vset.pattern.permute.xlu0 %v789_v62 }
 0x194   : > { %508 = vperm.xlu1 %683, %v438_v59   ;;  %523 = vperm.xlu0 %685, %v438_v59  }
 0x195   : > { %684 = vset.pattern.permute.xlu2 %v789_v62 }
 0x196   : > { %519 = vperm.xlu2 %684, %v437_v58  }
 0x19c   : > { %686 = vset.pattern.permute.xlu1 %v790_v63  ;;  %690 = vset.pattern.permute.xlu0 %v791_v0 }
 0x19d   : > { %534 = vperm.xlu1 %686, %v437_v58  }
 0x19e   : > { %687 = vset.pattern.permute.xlu2 %v790_v63 }
 0x19f   : > { %538 = vperm.xlu2 %687, %v438_v59  }
 0x1a5   : > { %688 = vset.pattern.permute.xlu1 %v791_v0 }
 0x1a6   : > { %549 = vperm.xlu1 %688, %v437_v58  }
 0x1a7   : > { %689 = vset.pattern.permute.xlu2 %v791_v0 }
 0x1a8   : > { %553 = vperm.xlu2 %689, %v438_v59  }
 0x1d5   : > { %v475_v1 = vpop.permute.xlu2 %474 }
 0x1d6   : > { %v482_v42 = vsub.f32 %v475_v1, %v481_v5 }
 0x1d8   : > { %v484_v53 = vand.u32 2147483647, %v482_v42 }
 0x1dd   : > { %v479_v2 = vpop.permute.xlu2 %478 }
 0x1de   : > { %v483_v22 = vsub.f32 %v479_v2, %v481_v5 }
 0x1e0   : > { %v485_v30 = vand.u32 2147483647, %v483_v22 }
 0x1e7   : > { %v505_v3 = vpop.permute.xlu2 %504 }
 0x1e8   : > { %v512_v56 = vsub.f32 %v505_v3, %v511_v29 }
 0x1ea   : > { %v514_v63 = vand.u32 2147483647, %v512_v56 }
 0x1ec   : > { %v460_v4 = vpop.permute.xlu1 %459  ;;  %v444_v6 = vpop.permute.xlu0 %443 }
 0x1ed   : > { %v452_v19 = vsub.f32 %v444_v6, %v451_v8  ;;  %v467_v28 = vsub.f32 %v460_v4, %v466_v13 }
 0x1ef   : > { %v454_v25 = vand.u32 2147483647, %v452_v19  ;;  %v469_v44 = vand.u32 2147483647, %v467_v28 }
 0x1f0   : > { %v520_v7 = vpop.permute.xlu2 %519 }
 0x1f1   : > { %v456_v35 = vadd.f32 %v761_v43, %v454_v25  ;;  %v527_v60 = vsub.f32 %v520_v7, %v526_v31 }
 0x1f3   : > { %v471_v50 = vadd.f32 %v469_v44, %v456_v35  ;;  %v529_v1 = vand.u32 2147483647, %v527_v60 }
 0x1f4   : > { %v464_v10 = vpop.permute.xlu1 %463  ;;  %v449_v11 = vpop.permute.xlu0 %448 }
 0x1f5   : > { %v453_v12 = vsub.f32 %v449_v11, %v451_v8  ;;  %v468_v16 = vsub.f32 %v464_v10, %v466_v13  ;;  %v486_v57 = vadd.f32 %v484_v53, %v471_v50 }
 0x1f7   : > { %v455_v14 = vand.u32 2147483647, %v453_v12  ;;  %v470_v23 = vand.u32 2147483647, %v468_v16 }
 0x1f9   : > { %v539_v15 = vpop.permute.xlu2 %538  ;;  %v457_v21 = vadd.f32 %v757_v47, %v455_v14 }
 0x1fa   : > { %v543_v39 = vsub.f32 %v539_v15, %v541_v27 }
 0x1fb   : > { %v472_v26 = vadd.f32 %v470_v23, %v457_v21 }
 0x1fc   : > { %v545_v51 = vand.u32 2147483647, %v543_v39 }
 0x1fd   : > { %v494_v17 = vpop.permute.xlu1 %493  ;;  %v490_v20 = vpop.permute.xlu0 %489  ;;  %v487_v38 = vadd.f32 %v485_v30, %v472_v26 }
 0x1fe   : > { %v498_v24 = vsub.f32 %v494_v17, %v496_v18  ;;  %v497_v45 = vsub.f32 %v490_v20, %v496_v18 }
 0x200   : > { %v500_v32 = vand.u32 2147483647, %v498_v24  ;;  %v499_v54 = vand.u32 2147483647, %v497_v45 }
 0x202   : > { %v554_v33 = vpop.permute.xlu2 %553  ;;  %v502_v46 = vadd.f32 %v500_v32, %v487_v38  ;;  %v501_v61 = vadd.f32 %v499_v54, %v486_v57 }
 0x203   : > { %v558_v49 = vsub.f32 %v554_v33, %v556_v34 }
 0x204   : > { %v516_v2 = vadd.f32 %v514_v63, %v501_v61 }
 0x205   : > { %v560_v43 = vand.u32 2147483647, %v558_v49 }
 0x206   : > { %v509_v36 = vpop.permute.xlu1 %508  ;;  %v524_v37 = vpop.permute.xlu0 %523  ;;  %v531_v9 = vadd.f32 %v529_v1, %v516_v2 }
 0x207   : > { %v513_v40 = vsub.f32 %v509_v36, %v511_v29  ;;  %v528_v41 = vsub.f32 %v524_v37, %v526_v31 }
 0x209   : > { %v515_v47 = vand.u32 2147483647, %v513_v40  ;;  %v530_v48 = vand.u32 2147483647, %v528_v41 }
 0x20b   : > { %v517_v52 = vadd.f32 %v515_v47, %v502_v46 }
 0x20d   : > { %v532_v55 = vadd.f32 %v530_v48, %v517_v52 }
 0x20f   : > { %v547_v58 = vadd.f32 %v545_v51, %v532_v55  ;;  %v535_v59 = vpop.permute.xlu1 %534 }
 0x210   : > { %v542_v0 = vsub.f32 %v535_v59, %v541_v27 }
 0x211   : > { %v562_v62 = vadd.f32 %v560_v43, %v547_v58  }
 0x212   : > { %v544_v4 = vand.u32 2147483647, %v542_v0 }
 0x213   : > { %v1031_v47 = vmov %v562_v62  ;;  %564 = vst [vmem:[#allocation7 + $0x8] sm:$0xff] (%p428_p0), %v562_v62 }
 0x214   : > { %v546_v11 = vadd.f32 %v544_v4, %v531_v9 }
 0x218   : > { %v550_v6 = vpop.permute.xlu1 %549 }
 0x219   : > { %v557_v10 = vsub.f32 %v550_v6, %v556_v34 }
 0x21b   : > { %v559_v8 = vand.u32 2147483647, %v557_v10  ;;  %430 = sbr.rel (!%p428_p0) target bundleno = 371 (0x173), region = 81 }
 0x21d   : > { %v561_v12 = vadd.f32 %v559_v8, %v546_v11  }
 0x21f   : > { %v1032_v43 = vmov %v561_v12  ;;  %563 = vst [vmem:[#allocation7] sm:$0xff] (%p428_p0), %v561_v12 }
 0x220   :  { %577 = dma.vmem_to_hbm [thread:$0]  %s570_s3, 256, %s572_s6, [#allocation6], %s768_s23, %s768_s23, %s769_s24  }
 0x221   :  { %753 = dma.done.wait [#allocation6], 256  }
 0x222   :  { %754 = vsyncadd [#allocation6], 4294967040 }
 0x223   :  { %582 = vsyncpa [#allocation5], 1 }
 0x224   :  { %583 = vsyncpa [#allocation6], 1 }

</bundles_post_ra>
